<compile_context>
chip_gen: v7x
topology: tpu7x:2x2x1
jax: 0.10.0
libtpu: 0.0.40
codegen_flags: <defaults>
</compile_context>

<pallas_src>
import functools

import jax
import jax.numpy as jnp
from jax.experimental import pallas as pl
from jax.experimental.pallas import tpu as pltpu

_LN_EPS = 1e-5


def _image_proj_kernel(x_ref, w_ref, b_ref, g_ref, beta_ref, o_ref,
                       *, tokens_per_tile, cross_dim):
    # x_ref:    (tb, D_in)   bf16 input embeddings (cast in wrapper)
    # w_ref:    (D_in, tn)   bf16 weight tile, tn = tokens_per_tile * cross_dim
    # b_ref:    (1, tn)      f32 bias tile
    # g_ref:    (1, D)       f32 LayerNorm gamma
    # beta_ref: (1, D)       f32 LayerNorm beta
    # o_ref:    (tb, tn)     lane-dense 2-D output tile
    d = cross_dim
    x = x_ref[...]                                       # bf16, loaded once
    tb = x.shape[0]

    # Hoist gamma/beta broadcasts out of the unrolled loop (JAX does not CSE
    # broadcast_in_dim; one broadcast each instead of tokens_per_tile).
    gamma = jnp.broadcast_to(g_ref[...], (tb, d))        # (tb, D) f32
    beta = jnp.broadcast_to(beta_ref[...], (tb, d))      # (tb, D) f32

    # Fused per-token matmul + bias + LayerNorm on 128-lane-aligned static
    # column slices.  Live f32 temp is only (tb, D); MXU(t+1) overlaps VPU(t).
    for t in range(tokens_per_tile):
        y = jnp.dot(x, w_ref[:, t * d:(t + 1) * d],
                    preferred_element_type=jnp.float32)  # (tb, D) f32
        y = y + b_ref[:, t * d:(t + 1) * d]              # broadcast (1, D)
        mean = jnp.mean(y, axis=-1, keepdims=True)
        centered = y - mean
        var = jnp.mean(centered * centered, axis=-1, keepdims=True)
        normed = centered * jax.lax.rsqrt(var + _LN_EPS)
        o_ref[:, t * d:(t + 1) * d] = (normed * gamma + beta).astype(o_ref.dtype)


def _largest_divisor(n, cap, multiple_of=1):
    best = None
    for d in range(1, min(n, cap) + 1):
        if n % d == 0 and d % multiple_of == 0:
            best = d
    return best


def image_proj_model(x, w, b, gamma, beta, *, num_tokens, cross_dim,
                     tile_b=None, tokens_per_tile=None, out_dtype=jnp.float32):
    """IP-Adapter ImageProjModel forward.

    x:     (B, clip_dim)                      image embeddings
    w:     (clip_dim, num_tokens*cross_dim)   pre-transposed Linear weight
    b:     (1, num_tokens*cross_dim)          Linear bias
    gamma: (1, cross_dim)                     LayerNorm weight
    beta:  (1, cross_dim)                     LayerNorm bias
    Returns (B, num_tokens, cross_dim) in out_dtype.
    """
    B, d_in = x.shape
    n_out = num_tokens * cross_dim
    assert w.shape == (d_in, n_out)
    assert b.shape == (1, n_out)
    assert gamma.shape == (1, cross_dim) and beta.shape == (1, cross_dim)
    # LN column-slicing and the (1, tn)/(d_in, tn) BlockSpecs assume lane
    # alignment of each token segment.
    assert cross_dim % 128 == 0, "cross_dim must be a multiple of 128"

    # --- Token/N tiling: whole tokens per block so LayerNorm is self-contained.
    # Default: largest divisor of num_tokens whose bf16 weight tile is <= 8 MiB
    # AND that leaves >= 2 token steps (weight double-buffering + both v7x TCs).
    if tokens_per_tile is None:
        tokens_per_tile = 1
        for cand in range(num_tokens, 0, -1):
            if num_tokens % cand:
                continue
            w_tile_bytes = d_in * cand * cross_dim * 2          # bf16
            enough_steps = (num_tokens // cand >= 2) or (num_tokens == 1)
            if w_tile_bytes <= (8 << 20) and enough_steps:
                tokens_per_tile = cand
                break
    assert num_tokens % tokens_per_tile == 0
    tn = tokens_per_tile * cross_dim

    # --- Batch/M tiling: one big tile when possible; cap lower when the token
    # tile is wide (v7x VMEM).  Prefer multiples of 8 for sublane alignment.
    if tile_b is None:
        cap = 128 if tn >= 2048 else 256
        if B <= cap:
            tile_b = B
        else:
            tile_b = _largest_divisor(B, cap, multiple_of=8) or B
        # Avoid a (1,1) grid (idles one v7x TensorCore, no pipelining).
        if (num_tokens // tokens_per_tile) == 1 and tile_b == B and B % 2 == 0:
            half = B // 2
            if half == B or half % 8 == 0 or half == _largest_divisor(B, half):
                tile_b = half
    assert B % tile_b == 0, "batch must be divisible by tile_b"

    # Token axis OUTER (slow), batch axis INNER (fast): weight tile block index
    # is constant across batch steps -> each weight tile streamed from HBM once.
    grid = (num_tokens // tokens_per_tile, B // tile_b)

    # Stream x and the (large) weight in bf16 -> native MXU path, half the HBM
    # bytes.  Bias / LayerNorm params stay f32.
    x_bf16 = x.astype(jnp.bfloat16)
    w_bf16 = w.astype(jnp.bfloat16)
    b = b.astype(jnp.float32)
    gamma = gamma.astype(jnp.float32)
    beta = beta.astype(jnp.float32)

    kernel = functools.partial(
        _image_proj_kernel, tokens_per_tile=tokens_per_tile, cross_dim=cross_dim)

    out_itemsize = jnp.dtype(out_dtype).itemsize
    cost = pl.CostEstimate(
        flops=2 * B * d_in * n_out,
        transcendentals=B * num_tokens,                  # one rsqrt per token
        bytes_accessed=(x_bf16.size * 2 + w_bf16.size * 2
                        + b.size * 4 + gamma.size * 4 + beta.size * 4
                        + B * n_out * out_itemsize),
    )

    # VMEM: double-buffered tiles + fused f32 matmul/LN temporaries + headroom,
    # capped below physical (48 MiB) so the compiler keeps internal scratch.
    tile_bytes = (2 * (tile_b * d_in * 2                 # x tile (bf16)
                       + d_in * tn * 2                   # weight tile (bf16)
                       + tn * 4                          # bias tile
                       + tile_b * tn * out_itemsize)     # output tile
                  + 4 * tile_b * cross_dim * 4           # fused f32 temps
                  + 2 * tile_b * cross_dim * 4)          # gamma/beta broadcasts
    vmem_limit = int(min(max(int(tile_bytes * 1.25) + (2 << 20), 8 << 20),
                         48 << 20))

    out2d = pl.pallas_call(
        kernel,
        out_shape=jax.ShapeDtypeStruct((B, n_out), out_dtype),
        grid_spec=pltpu.PrefetchScalarGridSpec(
            num_scalar_prefetch=0,
            grid=grid,                                    # (token tiles, batch tiles)
            in_specs=[
                pl.BlockSpec((tile_b, d_in), lambda j, i: (i, 0)),      # x
                pl.BlockSpec((d_in, tn), lambda j, i: (0, j)),          # weight
                pl.BlockSpec((1, tn), lambda j, i: (0, j)),             # bias
                pl.BlockSpec((1, cross_dim), lambda j, i: (0, 0)),      # gamma
                pl.BlockSpec((1, cross_dim), lambda j, i: (0, 0)),      # beta
            ],
            out_specs=pl.BlockSpec((tile_b, tn), lambda j, i: (i, j)),
        ),
        compiler_params=pltpu.CompilerParams(
            dimension_semantics=("parallel", "parallel"),
            vmem_limit_bytes=vmem_limit,
        ),
        cost_estimate=cost,
    )(x_bf16, w_bf16, b, gamma, beta)

    # Free layout plumbing in the wrapper keeps in-kernel stores lane-dense.
    return out2d.reshape(B, num_tokens, cross_dim)


def _reference(x, w, b, gamma, beta, num_tokens, cross_dim):
    y = x @ w + b[0]
    y = y.reshape(-1, num_tokens, cross_dim)
    mean = y.mean(-1, keepdims=True)
    var = ((y - mean) ** 2).mean(-1, keepdims=True)
    y = (y - mean) / jnp.sqrt(var + _LN_EPS)
    return y * gamma[0] + beta[0]


if __name__ == "__main__":
    # Small shapes consistent with the module's structure.
    B = 16                     # batch
    clip_embeddings_dim = 64   # input embedding dim
    cross_attention_dim = 128  # per-token output dim (lane-aligned)
    num_tokens = 4             # clip_extra_context_tokens

    key = jax.random.PRNGKey(0)
    kx, kw, kb, kg, kbe = jax.random.split(key, 5)

    x = jax.random.normal(kx, (B, clip_embeddings_dim), dtype=jnp.float32)

    # Deterministic parameter init (mimic nn.Linear uniform(-1/sqrt(fan_in), ..)).
    bound = 1.0 / jnp.sqrt(jnp.float32(clip_embeddings_dim))
    w = jax.random.uniform(
        kw, (clip_embeddings_dim, num_tokens * cross_attention_dim),
        minval=-bound, maxval=bound, dtype=jnp.float32)
    b = jax.random.uniform(
        kb, (1, num_tokens * cross_attention_dim),
        minval=-bound, maxval=bound, dtype=jnp.float32)
    # LayerNorm affine params (PyTorch default is ones/zeros; perturb to test semantics).
    gamma = 1.0 + 0.1 * jax.random.normal(kg, (1, cross_attention_dim), dtype=jnp.float32)
    beta = 0.1 * jax.random.normal(kbe, (1, cross_attention_dim), dtype=jnp.float32)

    # Default tiling: tokens_per_tile=2 (>=2 token-outer steps -> weight
    # streaming is double-buffered), whole small batch as one inner tile.
    out = image_proj_model(
        x, w, b, gamma, beta,
        num_tokens=num_tokens, cross_dim=cross_attention_dim)
    out = jax.block_until_ready(out)

    ref = _reference(x, w, b, gamma, beta, num_tokens, cross_attention_dim)
    assert out.shape == (B, num_tokens, cross_attention_dim)
    # bf16 x/weight streaming (f32 accumulation) -> loosened tolerance vs f32 ref.
    assert jnp.allclose(out, ref, atol=3e-2, rtol=3e-2), "mismatch vs reference"

    print("KERNEL_OK")
</pallas_src>

<mosaic_0001>
module attributes {stable_mosaic.version = 11 : i64} {
  func.func @_image_proj_kernel(%arg0: i32, %arg1: i32, %arg2: memref<16x64xbf16, #tpu.memory_space<vmem>>, %arg3: memref<64x256xbf16, #tpu.memory_space<vmem>>, %arg4: memref<1x256xf32, #tpu.memory_space<vmem>>, %arg5: memref<1x128xf32, #tpu.memory_space<vmem>>, %arg6: memref<1x128xf32, #tpu.memory_space<vmem>>, %arg7: memref<16x256xf32, #tpu.memory_space<vmem>>) attributes {dimension_semantics = [#tpu.dimension_semantics<parallel>, #tpu.dimension_semantics<parallel>], iteration_bounds = array<i64: 2, 1>, scalar_prefetch = 0 : i64, scratch_operands = 0 : i64, tpu.core_type = #tpu.core_type<tc>, window_params = [{transform_indices = @transform_0, window_bounds = array<i64: 16, 64>}, {transform_indices = @transform_1, window_bounds = array<i64: 64, 256>}, {transform_indices = @transform_2, window_bounds = array<i64: 1, 256>}, {pipeline_mode = #tpu.pipeline_mode<synchronous>, transform_indices = @transform_3, window_bounds = array<i64: 1, 128>}, {pipeline_mode = #tpu.pipeline_mode<synchronous>, transform_indices = @transform_4, window_bounds = array<i64: 1, 128>}, {transform_indices = @transform_5, window_bounds = array<i64: 16, 256>}]} {
    %c0 = arith.constant 0 : index
    %c0_0 = arith.constant 0 : index
    %0 = vector.load %arg2[%c0, %c0_0] : memref<16x64xbf16, #tpu.memory_space<vmem>>, vector<16x64xbf16>
    %c0_1 = arith.constant 0 : index
    %c0_2 = arith.constant 0 : index
    %1 = vector.load %arg5[%c0_1, %c0_2] : memref<1x128xf32, #tpu.memory_space<vmem>>, vector<1x128xf32>
    %2 = vector.shape_cast %1 : vector<1x128xf32> to vector<1x128xf32>
    %3 = vector.broadcast %2 : vector<1x128xf32> to vector<16x128xf32>
    %c0_3 = arith.constant 0 : index
    %c0_4 = arith.constant 0 : index
    %4 = vector.load %arg6[%c0_3, %c0_4] : memref<1x128xf32, #tpu.memory_space<vmem>>, vector<1x128xf32>
    %5 = vector.shape_cast %4 : vector<1x128xf32> to vector<1x128xf32>
    %6 = vector.broadcast %5 : vector<1x128xf32> to vector<16x128xf32>
    %c0_5 = arith.constant 0 : index
    %c0_6 = arith.constant 0 : index
    %7 = vector.load %arg3[%c0_5, %c0_6] : memref<64x256xbf16, #tpu.memory_space<vmem>>, vector<64x128xbf16>
    %cst = arith.constant dense<0.000000e+00> : vector<16x128xf32>
    %8 = tpu.matmul %0, %7, %cst {dimension_numbers = #tpu.dot_dimension_numbers<[1], [0], [0], [1], [0, 0, 1, 1], [], []>} : vector<16x64xbf16>, vector<64x128xbf16>, vector<16x128xf32> -> vector<16x128xf32>
    %c0_7 = arith.constant 0 : index
    %c0_8 = arith.constant 0 : index
    %9 = vector.load %arg4[%c0_7, %c0_8] : memref<1x256xf32, #tpu.memory_space<vmem>>, vector<1x128xf32>
    %10 = vector.broadcast %9 : vector<1x128xf32> to vector<16x128xf32>
    %11 = arith.addf %8, %10 : vector<16x128xf32>
    %cst_9 = arith.constant dense<0.000000e+00> : vector<16xf32>
    %12 = vector.multi_reduction <add>, %11, %cst_9 [1] : vector<16x128xf32> to vector<16xf32>
    %13 = vector.shape_cast %12 : vector<16xf32> to vector<16x1xf32>
    %cst_10 = arith.constant 1.280000e+02 : f32
    %14 = vector.broadcast %cst_10 : f32 to vector<16x1xf32>
    %15 = arith.divf %13, %14 : vector<16x1xf32>
    %16 = vector.broadcast %15 : vector<16x1xf32> to vector<16x128xf32>
    %17 = arith.subf %11, %16 : vector<16x128xf32>
    %18 = arith.mulf %17, %17 : vector<16x128xf32>
    %cst_11 = arith.constant dense<0.000000e+00> : vector<16xf32>
    %19 = vector.multi_reduction <add>, %18, %cst_11 [1] : vector<16x128xf32> to vector<16xf32>
    %20 = vector.shape_cast %19 : vector<16xf32> to vector<16x1xf32>
    %cst_12 = arith.constant 1.280000e+02 : f32
    %21 = vector.broadcast %cst_12 : f32 to vector<16x1xf32>
    %22 = arith.divf %20, %21 : vector<16x1xf32>
    %cst_13 = arith.constant 9.99999974E-6 : f32
    %23 = vector.broadcast %cst_13 : f32 to vector<16x1xf32>
    %24 = arith.addf %22, %23 : vector<16x1xf32>
    %25 = math.rsqrt %24 : vector<16x1xf32>
    %26 = vector.broadcast %25 : vector<16x1xf32> to vector<16x128xf32>
    %27 = arith.mulf %17, %26 : vector<16x128xf32>
    %28 = arith.mulf %27, %3 : vector<16x128xf32>
    %29 = arith.addf %28, %6 : vector<16x128xf32>
    %c0_14 = arith.constant 0 : index
    %c0_15 = arith.constant 0 : index
    %30 = vector.load %arg7[%c0_14, %c0_15] : memref<16x256xf32, #tpu.memory_space<vmem>>, vector<16x128xf32>
    tpu.vector_store %arg7[%c0_14, %c0_15], %29 {strides = array<i32>} : memref<16x256xf32, #tpu.memory_space<vmem>>, vector<16x128xf32>,
    %c0_16 = arith.constant 0 : index
    %c128 = arith.constant 128 : index
    %31 = vector.load %arg3[%c0_16, %c128] : memref<64x256xbf16, #tpu.memory_space<vmem>>, vector<64x128xbf16>
    %cst_17 = arith.constant dense<0.000000e+00> : vector<16x128xf32>
    %32 = tpu.matmul %0, %31, %cst_17 {dimension_numbers = #tpu.dot_dimension_numbers<[1], [0], [0], [1], [0, 0, 1, 1], [], []>} : vector<16x64xbf16>, vector<64x128xbf16>, vector<16x128xf32> -> vector<16x128xf32>
    %c0_18 = arith.constant 0 : index
    %c128_19 = arith.constant 128 : index
    %33 = vector.load %arg4[%c0_18, %c128_19] : memref<1x256xf32, #tpu.memory_space<vmem>>, vector<1x128xf32>
    %34 = vector.broadcast %33 : vector<1x128xf32> to vector<16x128xf32>
    %35 = arith.addf %32, %34 : vector<16x128xf32>
    %cst_20 = arith.constant dense<0.000000e+00> : vector<16xf32>
    %36 = vector.multi_reduction <add>, %35, %cst_20 [1] : vector<16x128xf32> to vector<16xf32>
    %37 = vector.shape_cast %36 : vector<16xf32> to vector<16x1xf32>
    %cst_21 = arith.constant 1.280000e+02 : f32
    %38 = vector.broadcast %cst_21 : f32 to vector<16x1xf32>
    %39 = arith.divf %37, %38 : vector<16x1xf32>
    %40 = vector.broadcast %39 : vector<16x1xf32> to vector<16x128xf32>
    %41 = arith.subf %35, %40 : vector<16x128xf32>
    %42 = arith.mulf %41, %41 : vector<16x128xf32>
    %cst_22 = arith.constant dense<0.000000e+00> : vector<16xf32>
    %43 = vector.multi_reduction <add>, %42, %cst_22 [1] : vector<16x128xf32> to vector<16xf32>
    %44 = vector.shape_cast %43 : vector<16xf32> to vector<16x1xf32>
    %cst_23 = arith.constant 1.280000e+02 : f32
    %45 = vector.broadcast %cst_23 : f32 to vector<16x1xf32>
    %46 = arith.divf %44, %45 : vector<16x1xf32>
    %cst_24 = arith.constant 9.99999974E-6 : f32
    %47 = vector.broadcast %cst_24 : f32 to vector<16x1xf32>
    %48 = arith.addf %46, %47 : vector<16x1xf32>
    %49 = math.rsqrt %48 : vector<16x1xf32>
    %50 = vector.broadcast %49 : vector<16x1xf32> to vector<16x128xf32>
    %51 = arith.mulf %41, %50 : vector<16x128xf32>
    %52 = arith.mulf %51, %3 : vector<16x128xf32>
    %53 = arith.addf %52, %6 : vector<16x128xf32>
    %c0_25 = arith.constant 0 : index
    %c128_26 = arith.constant 128 : index
    %54 = vector.load %arg7[%c0_25, %c128_26] : memref<16x256xf32, #tpu.memory_space<vmem>>, vector<16x128xf32>
    tpu.vector_store %arg7[%c0_25, %c128_26], %53 {strides = array<i32>} : memref<16x256xf32, #tpu.memory_space<vmem>>, vector<16x128xf32>,
    return
  }
  func.func @transform_0(%arg0: i32, %arg1: i32) -> (i32, i32) {
    %c0_i32 = arith.constant 0 : i32
    %c0_i32_0 = arith.constant 0 : i32
    return %arg1, %c0_i32 : i32, i32
  }
  func.func @transform_1(%arg0: i32, %arg1: i32) -> (i32, i32) {
    %c0_i32 = arith.constant 0 : i32
    %c0_i32_0 = arith.constant 0 : i32
    return %c0_i32, %arg0 : i32, i32
  }
  func.func @transform_2(%arg0: i32, %arg1: i32) -> (i32, i32) {
    %c0_i32 = arith.constant 0 : i32
    %c0_i32_0 = arith.constant 0 : i32
    return %c0_i32, %arg0 : i32, i32
  }
  func.func @transform_3(%arg0: i32, %arg1: i32) -> (i32, i32) {
    %c0_i32 = arith.constant 0 : i32
    %c0_i32_0 = arith.constant 0 : i32
    %c0_i32_1 = arith.constant 0 : i32
    return %c0_i32, %c0_i32_0 : i32, i32
  }
  func.func @transform_4(%arg0: i32, %arg1: i32) -> (i32, i32) {
    %c0_i32 = arith.constant 0 : i32
    %c0_i32_0 = arith.constant 0 : i32
    %c0_i32_1 = arith.constant 0 : i32
    return %c0_i32, %c0_i32_0 : i32, i32
  }
  func.func @transform_5(%arg0: i32, %arg1: i32) -> (i32, i32) {
    %c0_i32 = arith.constant 0 : i32
    return %arg1, %arg0 : i32, i32
  }
}

</mosaic_0001>

<bundles_post_ra>
// kernel: tpu_custom_call.1
= control target key start
LH: loop header
LB: loop body
LE: loop exit
PB: predicated region body
PF: predicated region fallthrough
CT: control target
= control target key end

     0   :  { %10 = vsyncpa [#allocation3], 0  ;;  %s1259_s0 = inlined_call_operand.hbm [shape: bf16[16,64], index: 0, kind: input, shape index: {}]   ;;  %s1260_s1 = inlined_call_operand.hbm [shape: bf16[64,512], index: 1, kind: input, shape index: {}]   ;;  %s1261_s2 = inlined_call_operand.vmem [shape: f32[1,512], index: 2, kind: input, shape index: {}]   ;;  %s1262_s3 = inlined_call_operand.vmem [shape: f32[1,128], index: 3, kind: input, shape index: {}]   ;;  %s1263_s4 = inlined_call_operand.vmem [shape: f32[1,128], index: 4, kind: input, shape index: {}]   ;;  %s1264_s5 = inlined_call_operand.hbm [shape: f32[16,512], index: 5, kind: output, shape index: {}]  }
   0x1   :  { %11 = vsyncpa [#allocation6], 0 }
   0x2   :  { %13 = vsyncpa [#allocation6 + $0x1], 0 }
   0x3   :  { %14 = vsyncpa [#allocation4], 0 }
   0x4   :  { %16 = vsyncpa [#allocation4 + $0x1], 0  ;;  %s1028_s18 = smov 0   ;;  %s1030_s19 = smov 0  }
   0x5   :  { %s1032_s20 = smov 0   ;;  %s1034_s21 = smov 0  }
   0x6   :  { %s1036_s22 = smov 0   ;;  %s1038_s23 = smov 0  }
   0x7 LB: > { %1273 = sst [smem:[#allocation11_spill]] %s983_s23  ;;  %s670_s24 = sadd.s32 4294967295, %s983_s23   ;;  %s983_s23 = sphi %s1038_s23, %s22_s23   ;;  %s979_s22 = sphi %s1036_s22, %s1294_s22   ;;  %s975_s21 = sphi %s1034_s21, %s1293_s21   ;;  %s971_s20 = sphi %s1032_s20, %s1292_s20   ;;  %s967_s19 = sphi %s1030_s19, %s1291_s19   ;;  %s963_s18 = sphi %s1028_s18, %s1290_s18  }
   0x8   : > { %s671_s25 = sadd.s32 4294967294, %s983_s23   ;;  %p74_p0 = scmp.ne.s32.totalorder %s971_s20, %s967_s19 }
   0x9   : > { %p75_p1 = scmp.eq.s32.totalorder %s983_s23, 0  ;;  %p80_p2 = scmp.ne.s32.totalorder %s967_s19, %s963_s18 }
   0xa   : > { %p1065_p3 = scmp.eq.s32.totalorder %s670_s24, 0  ;;  %p174_p5 = scmp.eq.s32.totalorder %s670_s24, 1 }
   0xb   : > { %p1069_p4 = por %p75_p1, %p74_p0  ;;  %p180_p7 = scmp.eq.s32.totalorder %s671_s25, 1 }
   0xc   : > { %s1274_s26 = scalar_select %p1065_p3, 1, 0 }
   0xd   : > { %p1075_p6 = por %p1065_p3, %p80_p2  ;;  %p1079_p8 = por %p174_p5, %p74_p0 }
   0xe   : > { %p672_p9 = scmp.ge.s32.totalorder %s983_s23, 1  ;;  %p1084_p10 = por %p180_p7, %p80_p2 }
   0xf   : > { %s1276_s28 = scalar_select %p1075_p6, 1, 0 }
  0x10   : > { %s1277_s29 = scalar_select %p1079_p8, 1, 0 }
  0x11   : > { %s1278_s30 = scalar_select %p1084_p10, 1, 0 }
  0x12   : > { %p187_p11 = scmp.lt.s32.totalorder %s983_s23, 3  ;;  %s985_s7 = smov [#allocation2]  }
  0x13   : > { %s202_s8 = sshll.u32 %s985_s7, 4  ;;  %p760_p1 = scmp.lt.s32.totalorder %s983_s23, 2  ;;  %s1093_s8 = int_to_ptr.vmem [resolvable:$true] %s202_s8 }
  0x14   : > { %p1089_p12 = pnand %p672_p9, %p187_p11  ;;  %s34_s11 = sadd.s32 1, %s979_s22 }
  0x15   : > { %p1107_p2 = pnand %p760_p1, %p1069_p4  ;;  %s839_s14 = scalar_lea.hbm %s1259_s0, 128 }
  0x16   : > { %s1279_s6 = scalar_select %p1089_p12, 1, 0 }
  0x17   : > { %p747_p13 = pneg %p1089_p12  ;;  %p840_p7 = scmp.ne.s32.totalorder %s1259_s0, %s839_s14 }
  0x18   : > { %s1281_s10 = scalar_select %p1107_p2, 1, 0 }
  0x19   : > { %p1101_p5 = pnand %p747_p13, %p1065_p3  ;;  %p846_p4 = scmp.lt.u32.totalorder %s839_s14, %s1259_s0 }
  0x1b   : > { %p841_p9 = pneg %p1101_p5 }
  0x1d   : > { %p842_p11 = pnand %p841_p9, %p840_p7 }
  0x1f   : > { %p843_p13 = pneg %p842_p11 }
  0x21   : > { %p848_p1 = pnand %p846_p4, %p843_p13 }
  0x23   : > { %851 = shalt.err (!%p848_p1)
}
  0x24   : > { %s852_s25 = scalar_lea.vmem %s1093_s8, 128  ;;  %p860_p6 = scmp.lt.s32.totalorder %s1093_s8, %s1093_s8 }
  0x25   : > { %p853_p0 = scmp.ne.s32.totalorder %s1093_s8, %s852_s25  ;;  %p861_p3 = scmp.lt.s32.totalorder %s852_s25, %s852_s25 }
  0x27   : > { %p855_p10 = pnand %p853_p0, %p841_p9  ;;  %p862_p12 = por %p861_p3, %p860_p6 }
  0x29   : > { %p856_p8 = pneg %p855_p10 }
  0x2b   : > { %p863_p2 = pnand %p862_p12, %p856_p8 }
  0x2d   : > { %866 = shalt.err (!%p863_p2)
}
  0x2e   : > { %s986_s27 = smov 64   ;;  %s987_s7 = smov 4  }
  0x2f   : > { %750 = dma.hbm_to_vmem [thread:$0]  (!%p1101_p5), %s1259_s0, 128, %s1093_s8, [#allocation3], %s986_s27, %s986_s27, %s987_s7  }
  0x30   : > { %p36_p10 = scmp.ge.s32.totalorder %s34_s11, 2  ;;  %s67_s14 = sadd.s32 1, %s971_s20 }
  0x31   : > { %s222_s15 = sand.u32 1, %s971_s20   ;;  %s703_s24 = sshll.u32 %s979_s22, 7 }
  0x32   : > { %s1296_s11 = smov (%p36_p10, %s34_s11), 0  ;;  %s675_s16 = sshll.u32 %s222_s15, 6 }
  0x33   : > { %s64_s17 = ssub.s32 %s979_s22, %s1296_s11  ;;  %s1143_s9 = scalar_lea.hbm %s1260_s1, %s703_s24 }
  0x34   : > { %p65_p3 = scmp.eq.s32.totalorder %s64_s17, 0  ;;  %s226_s8 = scalar_lea.vmem [#allocation5], %s675_s16 }
  0x35   : > { %s233_s27 = sshll.u32 %s226_s8, 4  ;;  %s1150_s12 = scalar_lea.sflag [#allocation6], %s222_s15  ;;  %s1148_s27 = int_to_ptr.vmem [resolvable:$true] %s233_s27 }
  0x36   : > { %s1146_s7 = scalar_select %p65_p3, %s971_s20, %s67_s14  }
  0x37   : > { %s867_s13 = scalar_lea.hbm %s1143_s9, 1024  ;;  %p1282_p8 = scmp.ne.s32.totalorder %s1281_s10, 0 }
  0x38   : > { %p868_p6 = scmp.ne.s32.totalorder %s1143_s9, %s867_s13  ;;  %s872_s24 = scalar_lea.hbm %s1260_s1, 2048 }
  0x39   : > { %p869_p12 = pneg %p1282_p8  ;;  %p873_p2 = scmp.lt.u32.totalorder %s1143_s9, %s1260_s1 }
  0x3a   : > { %p874_p7 = scmp.lt.u32.totalorder %s872_s24, %s867_s13  ;;  %p876_p11 = scmp.lt.u32.totalorder %s867_s13, %s1143_s9 }
  0x3b   : > { %p870_p0 = pnand %p869_p12, %p868_p6 }
  0x3c   : > { %p875_p9 = por %p874_p7, %p873_p2 }
  0x3d   : > { %p871_p5 = pneg %p870_p0 }
  0x3e   : > { %p877_p13 = por %p876_p11, %p875_p9 }
  0x40   : > { %p878_p4 = pnand %p877_p13, %p871_p5 }
  0x42   : > { %881 = shalt.err (!%p878_p4)
}
  0x43   : > { %s882_s14 = scalar_lea.vmem %s1148_s27, 1024  ;;  %s988_s15 = smov [#allocation5]  }
  0x44   : > { %p883_p1 = scmp.ne.s32.totalorder %s1148_s27, %s882_s14  ;;  %s887_s8 = sshll.u32 %s988_s15, 4  ;;  %s888_s8 = int_to_ptr.vmem [resolvable:$false] %s887_s8 }
  0x45   : > { %s889_s23 = scalar_lea.vmem %s888_s8, 2048  ;;  %p890_p6 = scmp.lt.s32.totalorder %s1148_s27, %s888_s8 }
  0x46   : > { %p885_p10 = pnand %p883_p1, %p869_p12  ;;  %p891_p0 = scmp.lt.s32.totalorder %s889_s23, %s882_s14 }
  0x48   : > { %p886_p3 = pneg %p885_p10  ;;  %p892_p2 = por %p891_p0, %p890_p6 }
  0x4a   : > { %p893_p7 = pnand %p892_p2, %p886_p3 }
  0x4c   : > { %896 = shalt.err (!%p893_p7)
}
  0x4d   : > { %s989_s13 = smov 256   ;;  %s990_s17 = smov 128  }
  0x4e   : > { %s991_s24 = smov 8   ;;  %p1283_p12 = scmp.ne.s32.totalorder %s1279_s6, 0 }
  0x4f   : > { %754 = dma.hbm_to_vmem [thread:$0]  (!%p1282_p8), %s1143_s9, 1024, %s1148_s27, %s1150_s12, %s989_s13, %s990_s17, %s991_s24  }
  0x50   : > { %253 = sbr.rel (%p1283_p12) target bundleno = 659 (0x293), region = 40  ;;  %p1284_p5 = scmp.ne.s32.totalorder (!%p1283_p12), %s1274_s26, 0 }
  0x57   : > { %950 = dma.done.wait (%p1284_p5), [#allocation3], 128  }
  0x58   : > { %952 = vsyncadd (%p1284_p5), [#allocation3], 4294967168  ;;  %s1185_s16 = sand.u32 1, %s967_s19   ;;  %p1285_p9 = scmp.ne.s32.totalorder %s1276_s28, 0 }
  0x59   : > { %s680_s25 = sshll.u32 %s1185_s16, 6  ;;  %s260_s14 = scalar_lea.sflag [#allocation6], %s1185_s16 }
  0x5a   : > { %s263_s15 = scalar_lea.vmem [#allocation5], %s680_s25 }
  0x5b   : > { %954 = dma.done.wait (%p1285_p9), %s260_s14, 1024  }
  0x5c   : > { %956 = vsyncadd (%p1285_p9), %s260_s14, 4294966272  ;;  %v992_v0 = vmov 0.0   ;;  %vm993_vm0 = vmmov 0   ;;  %v822_v1 = vld [vmem:[%s263_s15] ss:$8 sps:$4 sm:$0xff]   ;;  %v830_v9 = vld [vmem:[#allocation2] sm:$0xff]  }
  0x5d   : > { %715 = vmatprep.subr.bf16.mxu0 %v992_v0  ;;  %727 = vmatprep.subr.bf16.mxu1 %v992_v0  ;;  %v823_v2 = vld [vmem:[%s263_s15 + $0x4] ss:$8 sps:$4 sm:$0xff]   ;;  %v824_v3 = vld [vmem:[%s263_s15 + $0x10] ss:$8 sps:$4 sm:$0xff]   ;;  %v825_v4 = vld [vmem:[%s263_s15 + $0x14] ss:$8 sps:$4 sm:$0xff]  }
  0x5e   : > { %723 = vmatprep.mubr.msk.bf16.mxu0 %vm993_vm0, %v992_v0  ;;  %735 = vmatprep.mubr.msk.bf16.mxu1 %vm993_vm0, %v992_v0  ;;  %v826_v5 = vld [vmem:[%s263_s15 + $0x20] ss:$8 sps:$4 sm:$0xff]   ;;  %v827_v6 = vld [vmem:[%s263_s15 + $0x24] ss:$8 sps:$4 sm:$0xff]   ;;  %v828_v7 = vld [vmem:[%s263_s15 + $0x30] ss:$8 sps:$4 sm:$0xff]  }
  0x5f   : > { %716 = vmatpush3.bf16.msra.mxu0 %v822_v1  ;;  %728 = vmatpush3.bf16.msra.mxu1 %v823_v2  ;;  %v829_v8 = vld [vmem:[%s263_s15 + $0x34] ss:$8 sps:$4 sm:$0xff]   ;;  %vm364_vm1 = vcmask 523264   ;;  %s682_s26 = sshll.u32 %s975_s21, 1  ;;  %v683_v53 = vld [vmem:[%s1262_s3] ss:$0 sm:$0xff] }
  0x60   : > { %717 = vmatprep.subr.bf16.mxu0 %v992_v0  ;;  %729 = vmatprep.subr.bf16.mxu1 %v992_v0  ;;  %p297_p8 = scmp.lt.s32.totalorder %s682_s26, 3  ;;  %s681_s12 = sshll.u32 %s1185_s16, 5  ;;  %v684_v55 = vld [vmem:[%s1263_s4] ss:$0 sm:$0xff] }
  0x61   : > { %s293_s13 = scalar_lea.vmem [#allocation7], %s681_s12  ;;  %s704_s17 = sshll.u32 %s975_s21, 8 }
  0x62   : > { %s1298_s26 = smov (!%p297_p8, %s682_s26), 3  ;;  %s563_s24 = sshll.u32 %s293_s13, 4  ;;  %s1210_s24 = int_to_ptr.vmem [resolvable:$true] %s563_s24 }
  0x63   : > { %718 = vmatpush3.bf16.msra.mxu0 %v824_v3  ;;  %730 = vmatpush3.bf16.msra.mxu1 %v825_v4  ;;  %s299_s10 = scalar_lea.vmem %s1261_s2, %s1298_s26  ;;  %s1208_s15 = scalar_lea.hbm %s1264_s5, %s704_s17 }
  0x64   : > { %719 = vmatprep.subr.bf16.mxu0 %v992_v0  ;;  %731 = vmatprep.subr.bf16.mxu1 %v992_v0  ;;  %v685_v10 = vld [vmem:[%s299_s10] ss:$0 sm:$0xff]  ;;  %v692_v11 = vld [vmem:[%s299_s10 + $0x1] ss:$0 sm:$0xff]  ;;  %s547_s21 = scalar_lea.sflag [#allocation4], %s1185_s16  ;;  %s897_s26 = scalar_lea.vmem %s1210_s24, 512 }
  0x65   : > { %p898_p11 = scmp.ne.s32.totalorder %s1210_s24, %s897_s26  ;;  %p1286_p13 = scmp.ne.s32.totalorder %s1277_s29, 0 }
  0x66   : > { %s994_s28 = smov [#allocation7]  }
  0x67   : > { %720 = vmatpush3.bf16.msra.mxu0 %v826_v5  ;;  %732 = vmatpush3.bf16.msra.mxu1 %v827_v6  ;;  %p899_p4 = pnand %p898_p11, %p1286_p13  ;;  %s901_s6 = sshll.u32 %s994_s28, 4  ;;  %s902_s6 = int_to_ptr.vmem [resolvable:$false] %s901_s6 }
  0x68   : > { %721 = vmatprep.subr.bf16.mxu0 %v992_v0  ;;  %733 = vmatprep.subr.bf16.mxu1 %v992_v0  ;;  %s903_s10 = scalar_lea.vmem %s902_s6, 1024  ;;  %p904_p10 = scmp.lt.s32.totalorder %s1210_s24, %s902_s6 }
  0x69   : > { %p900_p1 = pneg %p899_p4  ;;  %p905_p3 = scmp.lt.s32.totalorder %s903_s10, %s897_s26 }
  0x6b   : > { %722 = vmatpush3.bf16.msra.mxu0 %v828_v7  ;;  %734 = vmatpush3.bf16.msra.mxu1 %v829_v8  ;;  %p906_p6 = por %p905_p3, %p904_p10 }
  0x6d   : > { %p907_p0 = pnand %p906_p6, %p900_p1 }
  0x6e   : > { %724 = vmatmul.mubr.msk.bf16.vlgmr.msra.gmra.mrb[0].mxu0 %vm364_vm1, %v830_v9  ;;  %736 = vmatmul.mubr.msk.bf16.vlgmr.msra.gmra.mrb[0].mxu1 %vm364_vm1, %v830_v9 }
 0x141   : > { %v402_v12 = vpop.f32.mrb[0].mxu0  ;;  %v511_v14 = vpop.f32.mrb[0].mxu1 }
 0x142   : > { %v403_v13 = vadd.f32 %v685_v10, %v402_v12  ;;  %v725_v15 = vpop.f32.mrb[1].mxu0  ;;  %v512_v16 = vadd.f32 %v692_v11, %v511_v14  ;;  %v737_v18 = vpop.f32.mrb[1].mxu1 }
 0x143   : > { %v405_v17 = vpop.f32.mrb[2].mxu0  ;;  %v514_v19 = vpop.f32.mrb[2].mxu1 }
 0x144   : > { %409 = vadd.xlane.f32.xlu0 %v403_v13  ;;  %v726_v20 = vpop.f32.mrb[3].mxu0  ;;  %518 = vadd.xlane.f32.xlu1 %v512_v16  ;;  %v515_v21 = vadd.f32 %v692_v11, %v514_v19  ;;  %v738_v22 = vpop.f32.mrb[3].mxu1  ;;  %v406_v23 = vadd.f32 %v685_v10, %v405_v17 }
 0x148   : > { %411 = vadd.xlane.f32.xlu0 %v406_v23  ;;  %520 = vadd.xlane.f32.xlu1 %v515_v21 }
 0x1d1   : > { %v410_v24 = vpop.xlane.xlu0 %409  ;;  %v519_v25 = vpop.xlane.xlu1 %518 }
 0x1d2   : > { %v414_v26 = vmul.f32 0.0078125, %v410_v24  ;;  %v522_v27 = vmul.f32 0.0078125, %v519_v25 }
 0x1d4   : > { %v416_v28 = vsub.f32 %v403_v13, %v414_v26  ;;  %v524_v30 = vsub.f32 %v512_v16, %v522_v27 }
 0x1d5   : > { %v412_v29 = vpop.xlane.xlu0 %411  ;;  %v521_v31 = vpop.xlane.xlu1 %520 }
 0x1d6   : > { %v415_v32 = vmul.f32 0.0078125, %v412_v29  ;;  %v418_v33 = vmul.f32 %v416_v28, %v416_v28  ;;  %v523_v34 = vmul.f32 0.0078125, %v521_v31  ;;  %v526_v37 = vmul.f32 %v524_v30, %v524_v30 }
 0x1d8   : > { %v417_v35 = vsub.f32 %v406_v23, %v415_v32  ;;  %420 = vadd.xlane.f32.xlu0 %v418_v33  ;;  %v525_v36 = vsub.f32 %v515_v21, %v523_v34 }
 0x1da   : > { %v419_v38 = vmul.f32 %v417_v35, %v417_v35  ;;  %v527_v39 = vmul.f32 %v525_v36, %v525_v36 }
 0x1dc   : > { %528 = vadd.xlane.f32.xlu0 %v526_v37  ;;  %422 = vadd.xlane.f32.xlu1 %v419_v38 }
 0x1e0   : > { %530 = vadd.xlane.f32.xlu1 %v527_v39 }
 0x265   : > { %v421_v40 = vpop.xlane.xlu0 %420 }
 0x266   : > { %v424_v41 = vmul.f32 0.0078125, %v421_v40 }
 0x268   : > { %v426_v42 = vadd.f32 1e-05, %v424_v41 }
 0x269   : > { %v423_v43 = vpop.xlane.xlu1 %422  ;;  %v529_v44 = vpop.xlane.xlu0 %528 }
 0x26a   : > { %831 = vrsqrt.f32 %v426_v42  ;;  %v425_v45 = vmul.f32 0.0078125, %v423_v43  ;;  %v532_v46 = vmul.f32 0.0078125, %v529_v44 }
 0x26c   : > { %v427_v47 = vadd.f32 1e-05, %v425_v45  ;;  %v534_v48 = vadd.f32 1e-05, %v532_v46 }
 0x26d   : > { %v531_v49 = vpop.xlane.xlu1 %530 }
 0x26e   : > { %833 = vrsqrt.f32 %v427_v47  ;;  %v533_v50 = vmul.f32 0.0078125, %v531_v49 }
 0x26f   : > { %835 = vrsqrt.f32 %v534_v48 }
 0x270   : > { %v535_v51 = vadd.f32 1e-05, %v533_v50 }
 0x272   : > { %837 = vrsqrt.f32 %v535_v51 }
 0x274   : > { %v832_v52 = vpop.eup %831 }
 0x275   : > { %v430_v54 = vmul.f32 %v832_v52, %v416_v28 }
 0x277   : > { %v432_v56 = vmul.f32 %v683_v53, %v430_v54 }
 0x278   : > { %v834_v57 = vpop.eup %833 }
 0x279   : > { %v836_v58 = vpop.eup %835  ;;  %v434_v59 = vadd.f32 %v684_v55, %v432_v56  ;;  %v431_v60 = vmul.f32 %v834_v57, %v417_v35 }
 0x27a   : > { %v538_v61 = vmul.f32 %v836_v58, %v524_v30 }
 0x27b   : > { %436 = vst [vmem:[%s293_s13] sm:$0xff] %v434_v59  ;;  %v433_v62 = vmul.f32 %v683_v53, %v431_v60 }
 0x27c   : > { %v838_v63 = vpop.eup %837  ;;  %v540_v0 = vmul.f32 %v683_v53, %v538_v61 }
 0x27d   : > { %v435_v1 = vadd.f32 %v684_v55, %v433_v62  ;;  %v539_v2 = vmul.f32 %v838_v63, %v525_v36 }
 0x27e   : > { %v542_v3 = vadd.f32 %v684_v55, %v540_v0 }
 0x27f   : > { %437 = vst [vmem:[%s293_s13 + $0x10] sm:$0xff] %v435_v1  ;;  %v541_v4 = vmul.f32 %v683_v53, %v539_v2 }
 0x280   : > { %544 = vst [vmem:[%s293_s13 + $0x8] sm:$0xff] %v542_v3 }
 0x281   : > { %v543_v5 = vadd.f32 %v684_v55, %v541_v4 }
 0x283   : > { %545 = vst [vmem:[%s293_s13 + $0x18] sm:$0xff] %v543_v5 }
 0x284   : > { %910 = shalt.err (!%p907_p0)
}
 0x285   : > { %s911_s9 = scalar_lea.hbm %s1208_s15, 512  ;;  %s915_s8 = scalar_lea.hbm %s1264_s5, 1024 }
 0x286   : > { %p912_p2 = scmp.ne.s32.totalorder %s1208_s15, %s911_s9  ;;  %p916_p5 = scmp.lt.u32.totalorder %s1208_s15, %s1264_s5 }
 0x287   : > { %p917_p9 = scmp.lt.u32.totalorder %s915_s8, %s911_s9  ;;  %p919_p11 = scmp.lt.u32.totalorder %s911_s9, %s1208_s15 }
 0x288   : > { %p913_p7 = pnand %p912_p2, %p1286_p13 }
 0x289   : > { %p918_p8 = por %p917_p9, %p916_p5 }
 0x28a   : > { %p914_p12 = pneg %p913_p7 }
 0x28b   : > { %p920_p4 = por %p919_p11, %p918_p8 }
 0x28d   : > { %p921_p1 = pnand %p920_p4, %p914_p12 }
 0x28f   : > { %924 = shalt.err (!%p921_p1)
}
 0x290   : > { %s995_s17 = smov 256   ;;  %s996_s25 = smov 512  }
 0x291   : > { %s997_s14 = smov 16  }
 0x292   : > { %745 = dma.vmem_to_hbm [thread:$0]  (%p1286_p13), %s1210_s24, 512, %s1208_s15, %s547_s21, %s995_s17, %s996_s25, %s997_s14  }
 0x293 PF: > { %s1287_s26 = sld [smem:[#allocation11_spill]]  ;;  %s578_s28 = sand.u32 1, %s963_s18  }
 0x294   : > { %p1288_p10 = scmp.ne.s32.totalorder %s1278_s30, 0  ;;  %s579_s6 = scalar_lea.sflag [#allocation4], %s578_s28 }
 0x299   : > { %p1289_p3 = scmp.ge.s32.totalorder %s1287_s26, 2 }
 0x29b   : > { %p756_p6 = pnand %p1289_p3, %p1288_p10 }
 0x29d   : > { %958 = dma.done.wait (!%p756_p6), %s579_s6, 512  }
 0x29e   : > { %960 = vsyncadd (!%p756_p6), %s579_s6, 4294966784  ;;  %s22_s23 = sadd.s32 1, %s1287_s26   ;;  %s1290_s18 = smov %s967_s19 }
 0x29f   : > { %p19_p0 = scmp.ge.s32.totalorder %s22_s23, 4   ;;  %s1291_s19 = smov %s971_s20 }
 0x2a0   : > { %s1292_s20 = smov %s1146_s7  ;;  %s1293_s21 = smov %s979_s22 }
 0x2a1   : > { %s1294_s22 = smov %s1296_s11  ;;  %21 = sbr.rel (!%p19_p0) target bundleno = 7 (0x7), region = 94 }
 0x2a8   :  { %584 = vsyncpa [#allocation3], 1 }
 0x2a9   :  { %586 = vsyncpa [#allocation3 + $0x1], 1 }
 0x2aa   :  { %587 = vsyncpa [#allocation6], 1 }
 0x2ab   :  { %589 = vsyncpa [#allocation6 + $0x1], 1 }
 0x2ac   :  { %590 = vsyncpa [#allocation4], 1 }
 0x2ad   :  { %592 = vsyncpa [#allocation4 + $0x1], 1 }

</bundles_post_ra>
